<compile_context>
chip_gen: v5e
topology: v5e:2x2
jax: 0.10.0
libtpu: 0.0.40
codegen_flags: <defaults>
</compile_context>

<pallas_src>
import functools
import math

import jax
import jax.numpy as jnp
from jax import lax
from jax.experimental import pallas as pl
from jax.experimental.pallas import tpu as pltpu


def _round_up(x, m):
    return ((x + m - 1) // m) * m


# ---------------------------------------------------------------------------
# Kernel 0: CP.forward = lhs * rel   (standalone, tiled over B)
# ---------------------------------------------------------------------------
def _mul_kernel(lhs_ref, rel_ref, out_ref):
    out_ref[...] = lhs_ref[...] * rel_ref[...]


def cp_forward(lhs, rel, *, tb=512):
    assert lhs.shape == rel.shape
    B, D = lhs.shape
    tb = min(tb, _round_up(B, 8))
    B_pad = _round_up(B, tb)
    if B_pad != B:
        lhs = jnp.pad(lhs, ((0, B_pad - B), (0, 0)))
        rel = jnp.pad(rel, ((0, B_pad - B), (0, 0)))
    out = pl.pallas_call(
        _mul_kernel,
        out_shape=jax.ShapeDtypeStruct((B_pad, D), lhs.dtype),
        grid=(B_pad // tb,),
        in_specs=[pl.BlockSpec((tb, D), lambda i: (i, 0)),
                  pl.BlockSpec((tb, D), lambda i: (i, 0))],
        out_specs=pl.BlockSpec((tb, D), lambda i: (i, 0)),
        compiler_params=pltpu.CompilerParams(
            dimension_semantics=("parallel",)),
    )(lhs, rel)
    return out[:B] if B_pad != B else out


# ---------------------------------------------------------------------------
# Kernel 1: dense scoring over all entities:
#   scores = (prod(pred_factors)) @ W_t      W_t : (D, E_pad), pre-transposed
# Grid = (entity tiles, B tiles): entity tile on the OUTER axis, so every
# weight tile is DMA'd from HBM exactly once and stays resident across the
# inner B loop; only the small pred factors are re-streamed.
# ---------------------------------------------------------------------------
def _dense_kernel(*refs, n_pred):
    pred_refs, wt_ref, out_ref = refs[:n_pred], refs[n_pred], refs[n_pred + 1]
    pred = pred_refs[0][...]
    for r in pred_refs[1:]:
        pred = pred * r[...]          # fused CP.forward (VPU, hides under MXU)
    # (tb, D) x (D, te) -> (tb, te): canonical (M,K)x(K,N); the weight tile is
    # lane-dense in the entity (N) dim, no in-kernel transpose.
    out_ref[...] = lax.dot_general(
        pred, wt_ref[...],
        dimension_numbers=(((1,), (0,)), ((), ())),
        preferred_element_type=jnp.float32,
    ).astype(out_ref.dtype)


def _pick_dense_tiles(B, D, E_pad, itemsize, n_pred, budget=40 << 20):
    # te = largest power-of-two divisor of E_pad that is <= 1024 (E_pad is a
    # multiple of 128, so te >= 128 and halving preserves divisibility).
    te = math.gcd(E_pad, 1024)
    tb = min(256, _round_up(B, 8))

    def fp(te_, tb_):  # double-buffered inputs + output block
        return 2 * (te_ * D + n_pred * tb_ * D + tb_ * te_) * itemsize

    while te > 128 and fp(te, tb) > budget:
        te //= 2
    while tb > 8 and fp(te, tb) > budget:
        tb = max(8, (tb // 2) // 8 * 8)
    return te, tb, fp(te, tb)


def calc_preds_all(pred_factors, ent_weight_t, *, e_out=None, out_dtype=None):
    """pred_factors: list of (B, D) arrays multiplied elementwise inside the
    kernel (1 -> plain scoring, 2 -> CP.forward fused).  ent_weight_t: (D, E_pad)
    pre-transposed/padded table."""
    n_pred = len(pred_factors)
    B, D = pred_factors[0].shape
    D2, E_pad = ent_weight_t.shape
    assert D == D2 and E_pad % 128 == 0, "pre-pad/transpose the table at init"
    out_dtype = out_dtype or pred_factors[0].dtype
    w_isize = jnp.dtype(ent_weight_t.dtype).itemsize
    p_isize = jnp.dtype(pred_factors[0].dtype).itemsize

    te, tb, fp = _pick_dense_tiles(B, D, E_pad, max(w_isize, p_isize), n_pred)
    B_pad = _round_up(B, tb)
    if B_pad != B:  # only the small pred side is padded per call
        pred_factors = [jnp.pad(p, ((0, B_pad - B), (0, 0))) for p in pred_factors]

    n_e, n_b = E_pad // te, B_pad // tb
    flops = 2 * B_pad * E_pad * D
    bytes_accessed = (E_pad * D * w_isize                        # table, once
                      + n_e * n_pred * B_pad * D * p_isize       # pred re-reads
                      + B_pad * E_pad * jnp.dtype(out_dtype).itemsize)

    pred_spec = pl.BlockSpec((tb, D), lambda e, b: (b, 0))
    out = pl.pallas_call(
        functools.partial(_dense_kernel, n_pred=n_pred),
        out_shape=jax.ShapeDtypeStruct((B_pad, E_pad), out_dtype),
        grid=(n_e, n_b),
        in_specs=[pred_spec] * n_pred
        + [pl.BlockSpec((D, te), lambda e, b: (0, e))],
        out_specs=pl.BlockSpec((tb, te), lambda e, b: (b, e)),
        compiler_params=pltpu.CompilerParams(
            dimension_semantics=("parallel", "parallel"),
            vmem_limit_bytes=int(min(56 << 20, max(32 << 20, fp + (8 << 20)))),
        ),
        cost_estimate=pl.CostEstimate(
            flops=flops, transcendentals=0, bytes_accessed=bytes_accessed),
    )(*pred_factors, ent_weight_t)

    e_out = E_pad if e_out is None else e_out
    if B_pad != B or e_out != E_pad:
        out = out[:B, :e_out]
    return out


# ---------------------------------------------------------------------------
# Kernel 2: scoring against a gathered candidate set (the bmm path):
#   scores[b, k] = sum_d ent_weight[idx[b, k], d] * pred[b, d]
# Candidate indices are scalar-prefetched into SMEM; each candidate row is
# DMA'd HBM->VMEM.  The gather is double-buffered across grid steps, with a
# single aggregated semaphore wait per step.
# ---------------------------------------------------------------------------
def _tgt_kernel(idx_ref, *refs, n_pred, tb, K):
    # idx_ref : (B_pad*K,) int32 in SMEM (scalar prefetch)
    # refs    : (*pred_factor_refs, ent_hbm, out_ref, buf, sem)
    pred_refs = refs[:n_pred]
    ent_hbm = refs[n_pred]           # (E, D) raw HBM ref (memory_space=ANY)
    out_ref = refs[n_pred + 1]       # (tb, K)
    buf = refs[n_pred + 2]           # (2, R, D) VMEM gather scratch
    sem = refs[n_pred + 3]           # (2,) DMA semaphores (one per slot)

    i = pl.program_id(0)
    nsteps = pl.num_programs(0)
    R = tb * K
    D = buf.shape[-1]
    slot = i % 2

    def start_gather(first_row, slot_):
        @pl.loop(0, R)
        def _(n):
            row = idx_ref[first_row + n]
            pltpu.make_async_copy(
                ent_hbm.at[pl.ds(row, 1)],
                buf.at[slot_].at[pl.ds(n, 1)],
                sem.at[slot_],
            ).start()

    # Prime slot 0 on the first step.
    @pl.when(i == 0)
    def _():
        start_gather(0, 0)

    # Prefetch the NEXT step's rows into the other slot before any wait (the
    # SMEM index reads happen before the wait; these DMAs overlap this step's
    # compute and the next step's pipeline work).
    @pl.when(i + 1 < nsteps)
    def _():
        start_gather((i + 1) * R, 1 - slot)

    # All R row copies of this tile signal sem[slot]; a single wait on a
    # descriptor covering the whole (R, D) slot consumes the same byte count.
    pltpu.make_async_copy(buf.at[slot], buf.at[slot], sem.at[slot]).wait()

    pred = pred_refs[0][...]
    for r in pred_refs[1:]:
        pred = pred * r[...]
    p = pred.astype(jnp.float32)                                # (tb, D)
    t = buf[slot].astype(jnp.float32).reshape(tb, K, D)         # gathered rows
    out_ref[...] = jnp.sum(t * p[:, None, :], axis=-1).astype(out_ref.dtype)


def calc_preds_tgt(pred_factors, ent_weight, tgt_ent_idx, *, tb=128):
    """pred_factors: list of (B, D) arrays multiplied elementwise inside the
    kernel.  ent_weight: (E, D).  tgt_ent_idx: (B, K) integer indices
    (assumed in range; out-of-range indices only hit the DMA bounds check)."""
    n_pred = len(pred_factors)
    B, D = pred_factors[0].shape
    Bi, K = tgt_ent_idx.shape
    assert B == Bi
    out_dtype = pred_factors[0].dtype
    w_isize = jnp.dtype(ent_weight.dtype).itemsize

    # Block size: largest power of two <= min(tb, B rounded to 8), shrunk so
    # the double-buffered gather scratch stays modest (fits v7x VMEM too).
    tb = min(tb, _round_up(B, 8))
    t = 8
    while t * 2 <= tb:
        t *= 2
    tb = t
    while tb > 8 and 2 * tb * K * D * w_isize > (8 << 20):
        tb //= 2

    B_pad = _round_up(B, tb)
    if B_pad != B:
        pred_factors = [jnp.pad(p, ((0, B_pad - B), (0, 0))) for p in pred_factors]
        tgt_ent_idx = jnp.pad(tgt_ent_idx, ((0, B_pad - B), (0, 0)))  # row-0 gathers
    R = tb * K
    n_b = B_pad // tb
    # Indices live in SMEM via scalar prefetch (needed for the cross-step
    # prefetch).  For very large B*K, chunk the call over B (or switch the
    # index operand to a blocked SMEM input) to bound SMEM usage.
    idx_flat = tgt_ent_idx.astype(jnp.int32).reshape(B_pad * K)

    need = (2 * R * D * w_isize                      # gather scratch
            + 2 * R * D * 4                          # f32 working set
            + 2 * (n_pred * tb * D * 4 + tb * K * 4))  # pipelined in/out blocks
    pred_spec = pl.BlockSpec((tb, D), lambda i, idx: (i, 0))

    out = pl.pallas_call(
        functools.partial(_tgt_kernel, n_pred=n_pred, tb=tb, K=K),
        out_shape=jax.ShapeDtypeStruct((B_pad, K), out_dtype),
        grid_spec=pltpu.PrefetchScalarGridSpec(
            num_scalar_prefetch=1,
            grid=(n_b,),
            in_specs=[pred_spec] * n_pred
            + [pl.BlockSpec(memory_space=pl.ANY)],    # entity table stays in HBM
            out_specs=pl.BlockSpec((tb, K), lambda i, idx: (i, 0)),
            scratch_shapes=[
                pltpu.VMEM((2, R, D), ent_weight.dtype),
                pltpu.SemaphoreType.DMA((2,)),
            ],
        ),
        compiler_params=pltpu.CompilerParams(
            # cross-step prefetch into persistent scratch -> sequential axis
            dimension_semantics=("arbitrary",),
            vmem_limit_bytes=int(min(56 << 20, max(32 << 20, need + (4 << 20)))),
        ),
    )(idx_flat, *pred_factors, ent_weight)

    return out[:B] if B_pad != B else out


# ---------------------------------------------------------------------------
# JAX-side analogue of the PyTorch CP module (KGE subclass).
# ---------------------------------------------------------------------------
class CPJax:
    """Embedding tables are N(0,1) * init_size (nn.Embedding default + *=0.001).

    The scored table (ent_embedding1) is additionally kept pre-padded and
    pre-transposed as (D, E_pad) for the dense scoring kernel — a one-time
    cost at init instead of a per-call jnp.pad copy of the full table plus an
    in-kernel transpose.  Pass table_dtype=jnp.bfloat16 to halve the HBM
    stream of the dense path (numerics decision; scores accumulate in f32)."""

    def __init__(self, num_ents, num_rels, dim_ent_embedding, dim_rel_embedding,
                 key, table_dtype=jnp.float32):
        self.num_ents = num_ents
        self.num_rels = num_rels
        self.dim_ent_embedding = dim_ent_embedding
        self.dim_rel_embedding = dim_rel_embedding
        self.init_size = 0.001
        k1, k2, k3 = jax.random.split(key, 3)
        self.ent_embedding = (self.init_size * jax.random.normal(
            k1, (num_ents, dim_ent_embedding), jnp.float32)).astype(table_dtype)
        self.rel_embedding = (self.init_size * jax.random.normal(
            k2, (num_rels, dim_rel_embedding), jnp.float32)).astype(table_dtype)
        self.ent_embedding1 = (self.init_size * jax.random.normal(
            k3, (num_ents, dim_ent_embedding), jnp.float32)).astype(table_dtype)

        # One-time padding + transpose of the scored table for the dense kernel.
        # TODO(synk): this keeps a second (D, E_pad) copy of ent_embedding1 in
        # HBM purely for the dense layout; drop the (E, D) copy if the gathered
        # candidate path is unused.
        e_pad = _round_up(num_ents, 128)
        w = self.ent_embedding1
        if e_pad != num_ents:
            w = jnp.pad(w, ((0, e_pad - num_ents), (0, 0)))
        self.ent_embedding1_t = w.T   # (D, E_pad), lane-dense in the entity dim

    def forward(self, lhs, rel):
        return cp_forward(lhs, rel)

    def get_preds(self, pred_embedding, tgt_ent_idx=None):
        if tgt_ent_idx is None:
            return calc_preds_all([pred_embedding], self.ent_embedding1_t,
                                  e_out=self.num_ents)
        return calc_preds_tgt([pred_embedding], self.ent_embedding1, tgt_ent_idx)

    def get_preds_fused(self, lhs, rel, tgt_ent_idx=None):
        # CP.forward fused into the scoring kernel: one pallas_call instead of
        # two and no (B, D) HBM round trip for the intermediate pred.
        if tgt_ent_idx is None:
            return calc_preds_all([lhs, rel], self.ent_embedding1_t,
                                  e_out=self.num_ents)
        return calc_preds_tgt([lhs, rel], self.ent_embedding1, tgt_ent_idx)

    # TODO(synk): load_from_ckpt_path reads a torch checkpoint from disk; no
    # Pallas equivalent (host-side I/O).


def _assert_close(got, want, tol):
    err = float(jnp.max(jnp.abs(got - want)))
    scale = float(jnp.max(jnp.abs(want))) + 1e-30
    assert err <= tol * scale, f"max abs err {err} vs scale {scale} (tol {tol})"


if __name__ == "__main__":
    key = jax.random.PRNGKey(0)
    k_model, k_pred, k_idx, k_lhs, k_rel = jax.random.split(key, 5)

    NUM_ENTS = 300    # not a multiple of 128 -> exercises one-time table padding
    NUM_RELS = 16
    DIM = 128
    B = 24            # not a multiple of the tiles -> exercises B padding
    K = 8

    model = CPJax(NUM_ENTS, NUM_RELS, DIM, DIM, k_model)

    # --- CP.forward: lhs * rel --------------------------------------------
    lhs_idx = jax.random.randint(k_lhs, (B,), 0, NUM_ENTS)
    rel_idx = jax.random.randint(k_rel, (B,), 0, NUM_RELS)
    lhs = jnp.take(model.ent_embedding, lhs_idx, axis=0)
    rel = jnp.take(model.rel_embedding, rel_idx, axis=0)
    fwd = jax.block_until_ready(model.forward(lhs, rel))
    assert fwd.shape == (B, DIM)
    _assert_close(fwd, lhs * rel, 1e-6)

    # unit-scale synthetic pred so the tolerance checks are meaningful
    pred_embedding = jax.random.normal(k_pred, (B, DIM), jnp.float32)
    tgt_ent_idx = jax.random.randint(k_idx, (B, K), 0, NUM_ENTS)

    # --- Path (a): dense scoring against all entities ----------------------
    scores_all = jax.block_until_ready(model.get_preds(pred_embedding))
    ref_all = pred_embedding @ model.ent_embedding1.T
    assert scores_all.shape == (B, NUM_ENTS)
    _assert_close(scores_all, ref_all, 1e-2)   # MXU vs XLA matmul rounding

    # --- Path (a'): dense scoring with CP.forward fused into the kernel ----
    lhs_u = jax.random.normal(jax.random.PRNGKey(1), (B, DIM), jnp.float32)
    rel_u = jax.random.normal(jax.random.PRNGKey(2), (B, DIM), jnp.float32)
    scores_fused = jax.block_until_ready(model.get_preds_fused(lhs_u, rel_u))
    ref_fused = (lhs_u * rel_u) @ model.ent_embedding1.T
    assert scores_fused.shape == (B, NUM_ENTS)
    _assert_close(scores_fused, ref_fused, 1e-2)

    # --- Path (b): scoring against a gathered candidate set (bmm path) -----
    scores_tgt = jax.block_until_ready(model.get_preds(pred_embedding, tgt_ent_idx))
    tgt_emb = jnp.take(model.ent_embedding1, tgt_ent_idx, axis=0)
    ref_tgt = jnp.sum(tgt_emb * pred_embedding[:, None, :], axis=-1)
    assert scores_tgt.shape == (B, K)
    _assert_close(scores_tgt, ref_tgt, 1e-4)

    # --- Path (b'): gathered-candidate scoring with fused CP.forward -------
    scores_tgt_f = jax.block_until_ready(
        model.get_preds_fused(lhs_u, rel_u, tgt_ent_idx))
    ref_tgt_f = jnp.sum(tgt_emb * (lhs_u * rel_u)[:, None, :], axis=-1)
    assert scores_tgt_f.shape == (B, K)
    _assert_close(scores_tgt_f, ref_tgt_f, 1e-4)

    print("KERNEL_OK")
</pallas_src>

<mosaic_0001>
module attributes {stable_mosaic.version = 11 : i64} {
  func.func @_mul_kernel(%arg0: i32, %arg1: memref<24x128xf32, #tpu.memory_space<vmem>>, %arg2: memref<24x128xf32, #tpu.memory_space<vmem>>, %arg3: memref<24x128xf32, #tpu.memory_space<vmem>>) attributes {dimension_semantics = [#tpu.dimension_semantics<parallel>], iteration_bounds = array<i64: 1>, scalar_prefetch = 0 : i64, scratch_operands = 0 : i64, tpu.core_type = #tpu.core_type<tc>, window_params = [{transform_indices = @transform_0, window_bounds = array<i64: 24, 128>}, {transform_indices = @transform_1, window_bounds = array<i64: 24, 128>}, {transform_indices = @transform_2, window_bounds = array<i64: 24, 128>}]} {
    %c0 = arith.constant 0 : index
    %c0_0 = arith.constant 0 : index
    %0 = vector.load %arg1[%c0, %c0_0] : memref<24x128xf32, #tpu.memory_space<vmem>>, vector<24x128xf32>
    %c0_1 = arith.constant 0 : index
    %c0_2 = arith.constant 0 : index
    %1 = vector.load %arg2[%c0_1, %c0_2] : memref<24x128xf32, #tpu.memory_space<vmem>>, vector<24x128xf32>
    %2 = arith.mulf %0, %1 : vector<24x128xf32>
    %c0_3 = arith.constant 0 : index
    %c0_4 = arith.constant 0 : index
    %3 = vector.load %arg3[%c0_3, %c0_4] : memref<24x128xf32, #tpu.memory_space<vmem>>, vector<24x128xf32>
    tpu.vector_store %arg3[%c0_3, %c0_4], %2 {strides = array<i32>} : memref<24x128xf32, #tpu.memory_space<vmem>>, vector<24x128xf32>,
    return
  }
  func.func @transform_0(%arg0: i32) -> (i32, i32) {
    %c0_i32 = arith.constant 0 : i32
    %c0_i32_0 = arith.constant 0 : i32
    return %arg0, %c0_i32 : i32, i32
  }
  func.func @transform_1(%arg0: i32) -> (i32, i32) {
    %c0_i32 = arith.constant 0 : i32
    %c0_i32_0 = arith.constant 0 : i32
    return %arg0, %c0_i32 : i32, i32
  }
  func.func @transform_2(%arg0: i32) -> (i32, i32) {
    %c0_i32 = arith.constant 0 : i32
    %c0_i32_0 = arith.constant 0 : i32
    return %arg0, %c0_i32 : i32, i32
  }
}

</mosaic_0001>

<bundles_post_ra>
// kernel: tpu_custom_call.1
= control target key start
LH: loop header
LB: loop body
LE: loop exit
PB: predicated region body
PF: predicated region fallthrough
CT: control target
= control target key end

     0   :  { %7 = vsyncpa [#allocation3], 0  ;;  %s197_s0 = inlined_call_operand.hbm [shape: f32[24,128], index: 0, kind: input, shape index: {}]   ;;  %s198_s1 = inlined_call_operand.hbm [shape: f32[24,128], index: 1, kind: input, shape index: {}]   ;;  %s199_s2 = inlined_call_operand.hbm [shape: f32[24,128], index: 2, kind: output, shape index: {}]  }
   0x1   :  { %8 = vsyncpa [#allocation6], 0 }
   0x2   :  { %9 = vsyncpa [#allocation4], 0  ;;  %s14_s11 = sshll.u32 %s197_s0, 4  ;;  %s159_s12 = smov [#allocation2]   ;;  %s15_s11 = int_to_ptr.hbm [resolvable:$true] %s14_s11 }
   0x3   :  { %s16_s13 = sshll.u32 %s159_s12, 4  ;;  %s27_s16 = sshll.u32 %s198_s1, 4  ;;  %s17_s13 = int_to_ptr.vmem [resolvable:$true] %s16_s13  ;;  %s28_s16 = int_to_ptr.hbm [resolvable:$true] %s27_s16 }
   0x4   :  { %s160_s17 = smov 128   ;;  %s161_s18 = smov 8  }
   0x5   :  { %22 = dma.hbm_to_vmem [thread:$0]  %s15_s11, 384, %s17_s13, [#allocation3], %s160_s17, %s160_s17, %s161_s18  }
   0x6   :  { %s162_s19 = smov [#allocation5]  }
   0x7   :  { %s29_s20 = sshll.u32 %s162_s19, 4  ;;  %s30_s20 = int_to_ptr.vmem [resolvable:$true] %s29_s20 }
   0x8   :  { %35 = dma.hbm_to_vmem [thread:$0]  %s28_s16, 384, %s30_s20, [#allocation6], %s160_s17, %s160_s17, %s161_s18  }
   0x9   :  { %153 = dma.done.wait [#allocation3], 384  }
   0xa   :  { %154 = vsyncadd [#allocation3], 4294966912 }
   0xb   :  { %155 = dma.done.wait [#allocation6], 384  }
   0xc   :  { %156 = vsyncadd [#allocation6], 4294966912  ;;  %v44_v0 = vld [vmem:[#allocation2] sm:$0xff]  ;;  %v47_v1 = vld [vmem:[#allocation5] sm:$0xff]  ;;  %s163_s0 = smov [#allocation7]   ;;  %s62_s23 = sshll.u32 %s199_s2, 4  ;;  %s63_s23 = int_to_ptr.hbm [resolvable:$true] %s62_s23 }
   0xd   :  { %v45_v2 = vld [vmem:[#allocation2 + $0x8] sm:$0xff]  ;;  %s60_s1 = sshll.u32 %s163_s0, 4  ;;  %v50_v3 = vmul.f32 %v47_v1, %v44_v0  ;;  %v48_v4 = vld [vmem:[#allocation5 + $0x8] sm:$0xff]  ;;  %v46_v5 = vld [vmem:[#allocation2 + $0x10] sm:$0xff]  ;;  %s61_s1 = int_to_ptr.vmem [resolvable:$true] %s60_s1 }
   0xe   :  { %v49_v6 = vld [vmem:[#allocation5 + $0x10] sm:$0xff]  ;;  %v51_v7 = vmul.f32 %v48_v4, %v45_v2 }
   0xf   :  { %v52_v8 = vmul.f32 %v49_v6, %v46_v5  ;;  %53 = vst [vmem:[#allocation7] sm:$0xff] %v50_v3 }
  0x10   :  { %54 = vst [vmem:[#allocation7 + $0x8] sm:$0xff] %v51_v7 }
  0x11   :  { %55 = vst [vmem:[#allocation7 + $0x10] sm:$0xff] %v52_v8 }
  0x12   :  { %68 = dma.vmem_to_hbm [thread:$0]  %s61_s1, 384, %s63_s23, [#allocation4], %s160_s17, %s160_s17, %s161_s18  }
  0x13   :  { %157 = dma.done.wait [#allocation4], 384  }
  0x14   :  { %158 = vsyncadd [#allocation4], 4294966912 }
  0x15   :  { %73 = vsyncpa [#allocation3], 1 }
  0x16   :  { %74 = vsyncpa [#allocation6], 1 }
  0x17   :  { %75 = vsyncpa [#allocation4], 1 }

</bundles_post_ra>
